<compile_context>
chip_gen: v7x
topology: tpu7x:2x2x1
jax: 0.10.0
libtpu: 0.0.40
codegen_flags: <defaults>
</compile_context>

<pallas_src>
import functools

import jax
import jax.numpy as jnp
from jax import lax
from jax.experimental import pallas as pl
from jax.experimental.pallas import tpu as pltpu

KERNEL_SIZE = 3  # fixed by the module: nn.ConvTranspose1d(..., kernel_size=3)


def _upconv1d_kernel(x_ref, halo_ref, w_ref, b_ref, o_ref, *,
                     stride, tile_len, c_out, chunk, seq_len, mask_rows,
                     compute_dtype):
    """One (batch, wide-row tile) step of the phase-decomposed ConvTranspose1d.

    x_ref    : (1, TL, C_in)     input rows [j*TL, j*TL+TL) (may overhang L)
    halo_ref : (1, 1, 2, C_in)   input rows [j*TL-2, j*TL), pre-zeroed where OOB
    w_ref    : (C_in, 3*C_out)   tap-major packed weight  [W0 | W1 | W2]
    b_ref    : (1, C_out)        bias
    o_ref    : (1, TL, S*C_out)  o[0, q, r*C_out:(r+1)*C_out] == y[b, q*S + r, :]
    """
    j = pl.program_id(1)
    w = w_ref[...].astype(compute_dtype)
    bias = b_ref[...]                                     # (1, C_out) f32

    for s0 in range(0, tile_len, chunk):
        ch = min(chunk, tile_len - s0)

        # Two rows preceding this chunk (needed by the shifted taps d=1,2).
        if s0 == 0:
            prev2 = halo_ref[0, 0]                        # (2, C_in)
        else:
            prev2 = x_ref[0, s0 - 2:s0, :]                # (2, C_in)
        xc = x_ref[0, s0:s0 + ch, :]                      # (ch, C_in)
        x_ext = jnp.concatenate([prev2, xc], axis=0)      # (ch+2, C_in)

        if mask_rows:
            # Zero rows whose global index is >= L (block overhang / clamped
            # block); the wrapper already zeroed the rows with index < 0.
            rows = (j * tile_len + s0 - 2) + lax.broadcasted_iota(
                jnp.int32, (ch + 2, 1), 0)
            x_ext = jnp.where(rows < seq_len, x_ext, 0.0)

        # One fused MXU matmul per chunk produces all three taps at once; the
        # (ch+2, 3*C_out) result is consumed from registers below.
        y = jnp.dot(x_ext.astype(compute_dtype), w,
                    preferred_element_type=jnp.float32)   # (ch+2, 3*C_out)

        bias_bc = jnp.broadcast_to(bias, (ch, c_out))
        for r in range(stride):
            acc = bias_bc
            for d in range(KERNEL_SIZE):
                k = d * stride + r
                if k < KERNEL_SIZE:
                    # x_ext row (q + 2 - d) holds global input row q - d.
                    acc = acc + y[2 - d:2 - d + ch, k * c_out:(k + 1) * c_out]
            # Single lane-aligned store per phase column; o_ref is never read.
            o_ref[0, s0:s0 + ch, r * c_out:(r + 1) * c_out] = acc


def upconv1d(x, w_pt, bias, stride, *, tile_len=None, chunk=64,
             compute_dtype=jnp.float32):
    """UpConv1D forward.

    x    : (B, L, C_in)       float32 (module input, before the permutes)
    w_pt : (C_in, C_out, 3)   PyTorch ConvTranspose1d weight layout
    bias : (C_out,)
    returns (B, (L - 1) * stride + 3, C_out) float32
    """
    B, L, c_in = x.shape
    c_out = w_pt.shape[1]
    S = int(stride)
    L_out = (L - 1) * S + KERNEL_SIZE
    Lw = -(-L_out // S)                    # per-phase ("wide") output rows needed

    # Lane-pad C_out so every phase column is a 128-lane-aligned block.
    c_out_p = ((c_out + 127) // 128) * 128

    # ---- generation-aware tiling / VMEM budget ---------------------------
    try:
        vmem_cap = int(pltpu.get_tpu_info().vmem_capacity_bytes)
    except Exception:
        vmem_cap = 64 * 1024 * 1024        # conservative (v7x-sized)
    if tile_len is None:
        tile_len = 1024 if vmem_cap >= (96 << 20) else 512
    bytes_per_row = 4 * (c_in + S * c_out_p)               # in + out rows, f32
    row_budget = max(8, int(0.35 * vmem_cap) // (2 * bytes_per_row))
    tl = min(int(tile_len), row_budget, ((Lw + 7) // 8) * 8)
    tl = max(8, (tl // 8) * 8)
    num_tiles = -(-Lw // tl)
    R = num_tiles * tl
    chunk = max(8, min(int(chunk), tl))
    max_in_blk = max(0, (L - 1) // tl)     # clamp: input blocks never start past L
    mask_rows = S < KERNEL_SIZE            # rows >= L can pollute valid outputs

    # ---- layout glue (tiny; no full-size pad/copy of x) -------------------
    x_f32 = x.astype(jnp.float32)
    w_flat = jnp.transpose(w_pt.astype(jnp.float32), (0, 2, 1))   # (C_in, 3, C_out)
    b_f32 = bias.astype(jnp.float32)
    if c_out_p != c_out:
        w_flat = jnp.pad(w_flat, ((0, 0), (0, 0), (0, c_out_p - c_out)))
        b_f32 = jnp.pad(b_f32, (0, c_out_p - c_out))
    w_flat = w_flat.reshape(c_in, KERNEL_SIZE * c_out_p)
    b2d = b_f32.reshape(1, c_out_p)

    # 2-row left halo per tile (global rows j*tl-2, j*tl-1), zeroed where OOB.
    starts = jnp.arange(num_tiles, dtype=jnp.int32) * tl
    hidx = starts[:, None] + jnp.arange(-2, 0, dtype=jnp.int32)[None, :]   # (T, 2)
    hvalid = (hidx >= 0) & (hidx < L)
    x_halo = jnp.take(x_f32, jnp.clip(hidx, 0, L - 1), axis=1)             # (B,T,2,C_in)
    x_halo = jnp.where(hvalid[None, :, :, None], x_halo, 0.0)

    kernel = functools.partial(
        _upconv1d_kernel, stride=S, tile_len=tl, c_out=c_out_p, chunk=chunk,
        seq_len=L, mask_rows=mask_rows, compute_dtype=compute_dtype)

    blk_bytes = 4 * (tl * c_in + 2 * c_in + c_in * KERNEL_SIZE * c_out_p
                     + c_out_p + tl * S * c_out_p)
    vmem_limit = min(int(0.8 * vmem_cap),
                     max(32 * 1024 * 1024, 3 * blk_bytes + (4 << 20)))

    out_wide = pl.pallas_call(
        kernel,
        out_shape=jax.ShapeDtypeStruct((B, R, S * c_out_p), jnp.float32),
        grid_spec=pltpu.PrefetchScalarGridSpec(
            num_scalar_prefetch=0,
            grid=(B, num_tiles),
            in_specs=[
                pl.BlockSpec((1, tl, c_in),
                             lambda b, j: (b, jnp.minimum(j, max_in_blk), 0)),
                pl.BlockSpec((1, 1, 2, c_in), lambda b, j: (b, j, 0, 0)),
                pl.BlockSpec((c_in, KERNEL_SIZE * c_out_p), lambda b, j: (0, 0)),
                pl.BlockSpec((1, c_out_p), lambda b, j: (0, 0)),
            ],
            out_specs=pl.BlockSpec((1, tl, S * c_out_p), lambda b, j: (b, j, 0)),
        ),
        compiler_params=pltpu.CompilerParams(
            dimension_semantics=("parallel", "parallel"),
            vmem_limit_bytes=int(vmem_limit)),
    )(x_f32, x_halo, w_flat, b2d)

    # Free interleave: (B, R, S*C_out_p) -> (B, R*S, C_out_p) is a row-major
    # bitcast reshape; then crop rows/lanes to the true ConvTranspose1d output.
    # TODO(synk): if the consumer lives in the same jit, return the padded slab
    # and crop there so the row/lane crop fuses instead of re-streaming HBM.
    return out_wide.reshape(B, R * S, c_out_p)[:, :L_out, :c_out]


def ref_upconv1d(x, w_pt, bias, stride):
    """Plain-JAX reference matching PyTorch ConvTranspose1d semantics."""
    B, L, c_in = x.shape
    c_out = w_pt.shape[1]
    L_out = (L - 1) * stride + KERNEL_SIZE
    out = jnp.zeros((B, L_out, c_out), jnp.float32) + bias
    for k in range(KERNEL_SIZE):
        yk = jnp.einsum("blc,cd->bld", x, w_pt[:, :, k])
        out = out.at[:, k:k + (L - 1) * stride + 1:stride, :].add(yk)
    return out


if __name__ == "__main__":
    key = jax.random.PRNGKey(0)
    configs = [
        # (B, L, C_in, C_out, stride, tile_len)
        (2, 16, 64, 128, 2, 8),     # multi-tile, clamped last input block + halo
        (2, 16, 32, 128, 4, 512),   # stride > kernel_size (bias-only phases)
        (1, 16, 32, 128, 1, 512),   # stride 1 (all taps share one phase)
        (2, 300, 192, 96, 2, 256),  # multi-chunk, lane-padded C_out, row mask
    ]
    for i, (B, L, c_in, c_out, stride, tl) in enumerate(configs):
        kx, kw, kb, key = jax.random.split(key, 4)
        x = jax.random.normal(kx, (B, L, c_in), dtype=jnp.float32)
        # Same shapes as nn.ConvTranspose1d(c_in, c_out, 3) parameters.
        bound = 1.0 / (c_in * KERNEL_SIZE) ** 0.5
        w_pt = jax.random.uniform(kw, (c_in, c_out, KERNEL_SIZE), jnp.float32,
                                  -bound, bound)
        bias = jax.random.uniform(kb, (c_out,), jnp.float32, -bound, bound)

        out = jax.block_until_ready(upconv1d(x, w_pt, bias, stride, tile_len=tl))
        ref = ref_upconv1d(x, w_pt, bias, stride)

        assert out.shape == (B, (L - 1) * stride + KERNEL_SIZE, c_out), (i, out.shape)
        err = float(jnp.max(jnp.abs(out - ref)))
        assert jnp.allclose(out, ref, atol=1e-4, rtol=1e-4), (i, err)
    print("KERNEL_OK")
</pallas_src>

<mosaic_0001>
module attributes {stable_mosaic.version = 11 : i64} {
  func.func @_upconv1d_kernel(%arg0: i32, %arg1: i32, %arg2: memref<1x8x64xf32, #tpu.memory_space<vmem>>, %arg3: memref<1x1x2x64xf32, #tpu.memory_space<vmem>>, %arg4: memref<64x384xf32, #tpu.memory_space<vmem>>, %arg5: memref<1x128xf32, #tpu.memory_space<vmem>>, %arg6: memref<1x8x256xf32, #tpu.memory_space<vmem>>) attributes {dimension_semantics = [#tpu.dimension_semantics<parallel>, #tpu.dimension_semantics<parallel>], iteration_bounds = array<i64: 2, 3>, scalar_prefetch = 0 : i64, scratch_operands = 0 : i64, tpu.core_type = #tpu.core_type<tc>, window_params = [{transform_indices = @transform_0, window_bounds = array<i64: 1, 8, 64>}, {transform_indices = @transform_1, window_bounds = array<i64: 1, 1, 2, 64>}, {pipeline_mode = #tpu.pipeline_mode<synchronous>, transform_indices = @transform_2, window_bounds = array<i64: 64, 384>}, {pipeline_mode = #tpu.pipeline_mode<synchronous>, transform_indices = @transform_3, window_bounds = array<i64: 1, 128>}, {transform_indices = @transform_4, window_bounds = array<i64: 1, 8, 256>}]} {
    %c0 = arith.constant 0 : index
    %c0_0 = arith.constant 0 : index
    %0 = vector.load %arg4[%c0, %c0_0] : memref<64x384xf32, #tpu.memory_space<vmem>>, vector<64x384xf32>
    %c0_1 = arith.constant 0 : index
    %c0_2 = arith.constant 0 : index
    %1 = vector.load %arg5[%c0_1, %c0_2] : memref<1x128xf32, #tpu.memory_space<vmem>>, vector<1x128xf32>
    %c0_3 = arith.constant 0 : index
    %c0_4 = arith.constant 0 : index
    %c0_5 = arith.constant 0 : index
    %c0_6 = arith.constant 0 : index
    %2 = vector.load %arg3[%c0_3, %c0_4, %c0_5, %c0_6] : memref<1x1x2x64xf32, #tpu.memory_space<vmem>>, vector<1x1x2x64xf32>
    %3 = vector.shape_cast %2 : vector<1x1x2x64xf32> to vector<2x64xf32>
    %c0_7 = arith.constant 0 : index
    %c0_8 = arith.constant 0 : index
    %c0_9 = arith.constant 0 : index
    %4 = vector.load %arg2[%c0_7, %c0_8, %c0_9] : memref<1x8x64xf32, #tpu.memory_space<vmem>>, vector<1x8x64xf32>
    %5 = vector.shape_cast %4 : vector<1x8x64xf32> to vector<8x64xf32>
    %6 = tpu.concatenate %3, %5 in 0 : vector<2x64xf32>, vector<8x64xf32> -> vector<10x64xf32>
    %c8_i32 = arith.constant 8 : i32
    %7 = arith.muli %arg1, %c8_i32 : i32
    %c0_i32 = arith.constant 0 : i32
    %8 = arith.addi %7, %c0_i32 : i32
    %c2_i32 = arith.constant 2 : i32
    %9 = arith.subi %8, %c2_i32 : i32
    %10 = tpu.iota {dimensions = array<i32: 0>} : vector<10x1xi32>
    %11 = vector.broadcast %9 : i32 to vector<10x1xi32>
    %12 = arith.addi %11, %10 : vector<10x1xi32>
    %c16_i32 = arith.constant 16 : i32
    %13 = vector.broadcast %c16_i32 : i32 to vector<10x1xi32>
    %14 = arith.cmpi slt, %12, %13 : vector<10x1xi32>
    %cst = arith.constant 0.000000e+00 : f32
    %15 = vector.shape_cast %14 : vector<10x1xi1> to vector<10x1xi1>
    %16 = vector.broadcast %15 : vector<10x1xi1> to vector<10x64xi1>
    %17 = vector.broadcast %cst : f32 to vector<10x64xf32>
    %18 = arith.select %16, %6, %17 : vector<10x64xi1>, vector<10x64xf32>
    %cst_10 = arith.constant dense<0.000000e+00> : vector<10x384xf32>
    %19 = tpu.matmul %18, %0, %cst_10 {dimension_numbers = #tpu.dot_dimension_numbers<[1], [0], [0], [1], [0, 0, 1, 1], [], []>} : vector<10x64xf32>, vector<64x384xf32>, vector<10x384xf32> -> vector<10x384xf32>
    %20 = vector.shape_cast %1 : vector<1x128xf32> to vector<1x128xf32>
    %21 = vector.broadcast %20 : vector<1x128xf32> to vector<8x128xf32>
    %22 = vector.extract_strided_slice %19 {offsets = [2, 0], sizes = [8, 128], strides = [1, 1]} : vector<10x384xf32> to vector<8x128xf32>
    %23 = arith.addf %21, %22 : vector<8x128xf32>
    %24 = vector.extract_strided_slice %19 {offsets = [1, 256], sizes = [8, 128], strides = [1, 1]} : vector<10x384xf32> to vector<8x128xf32>
    %25 = arith.addf %23, %24 : vector<8x128xf32>
    %c0_11 = arith.constant 0 : index
    %c0_12 = arith.constant 0 : index
    %c0_13 = arith.constant 0 : index
    %26 = vector.load %arg6[%c0_11, %c0_12, %c0_13] : memref<1x8x256xf32, #tpu.memory_space<vmem>>, vector<1x8x128xf32>
    %27 = vector.shape_cast %26 : vector<1x8x128xf32> to vector<8x128xf32>
    %28 = vector.shape_cast %25 : vector<8x128xf32> to vector<1x8x128xf32>
    tpu.vector_store %arg6[%c0_11, %c0_12, %c0_13], %28 {strides = array<i32>} : memref<1x8x256xf32, #tpu.memory_space<vmem>>, vector<1x8x128xf32>,
    %29 = vector.extract_strided_slice %19 {offsets = [2, 128], sizes = [8, 128], strides = [1, 1]} : vector<10x384xf32> to vector<8x128xf32>
    %30 = arith.addf %21, %29 : vector<8x128xf32>
    %c0_14 = arith.constant 0 : index
    %c0_15 = arith.constant 0 : index
    %c128 = arith.constant 128 : index
    %31 = vector.load %arg6[%c0_14, %c0_15, %c128] : memref<1x8x256xf32, #tpu.memory_space<vmem>>, vector<1x8x128xf32>
    %32 = vector.shape_cast %31 : vector<1x8x128xf32> to vector<8x128xf32>
    %33 = vector.shape_cast %30 : vector<8x128xf32> to vector<1x8x128xf32>
    tpu.vector_store %arg6[%c0_14, %c0_15, %c128], %33 {strides = array<i32>} : memref<1x8x256xf32, #tpu.memory_space<vmem>>, vector<1x8x128xf32>,
    return
  }
  func.func @transform_0(%arg0: i32, %arg1: i32) -> (i32, i32, i32) {
    %c1_i32 = arith.constant 1 : i32
    %0 = arith.minsi %arg1, %c1_i32 : i32
    %c0_i32 = arith.constant 0 : i32
    %c0_i32_0 = arith.constant 0 : i32
    return %arg0, %0, %c0_i32 : i32, i32, i32
  }
  func.func @transform_1(%arg0: i32, %arg1: i32) -> (i32, i32, i32, i32) {
    %c0_i32 = arith.constant 0 : i32
    %c0_i32_0 = arith.constant 0 : i32
    %c0_i32_1 = arith.constant 0 : i32
    return %arg0, %arg1, %c0_i32, %c0_i32_0 : i32, i32, i32, i32
  }
  func.func @transform_2(%arg0: i32, %arg1: i32) -> (i32, i32) {
    %c0_i32 = arith.constant 0 : i32
    %c0_i32_0 = arith.constant 0 : i32
    %c0_i32_1 = arith.constant 0 : i32
    return %c0_i32, %c0_i32_0 : i32, i32
  }
  func.func @transform_3(%arg0: i32, %arg1: i32) -> (i32, i32) {
    %c0_i32 = arith.constant 0 : i32
    %c0_i32_0 = arith.constant 0 : i32
    %c0_i32_1 = arith.constant 0 : i32
    return %c0_i32, %c0_i32_0 : i32, i32
  }
  func.func @transform_4(%arg0: i32, %arg1: i32) -> (i32, i32, i32) {
    %c0_i32 = arith.constant 0 : i32
    %c0_i32_0 = arith.constant 0 : i32
    return %arg0, %arg1, %c0_i32 : i32, i32, i32
  }
}

</mosaic_0001>

<bundles_post_ra>
// kernel: tpu_custom_call.1
= control target key start
LH: loop header
LB: loop body
LE: loop exit
PB: predicated region body
PF: predicated region fallthrough
CT: control target
= control target key end

     0   :  { %s1484_s0 = inlined_call_operand.hbm [shape: f32[2,16,64], index: 0, kind: input, shape index: {}]   ;;  %s1485_s1 = inlined_call_operand.hbm [shape: f32[2,3,2,64], index: 1, kind: input, shape index: {}]   ;;  %s1486_s2 = inlined_call_operand.hbm [shape: f32[64,384], index: 2, kind: input, shape index: {}]   ;;  %s1487_s3 = inlined_call_operand.vmem [shape: f32[1,128], index: 3, kind: input, shape index: {}]   ;;  %s1488_s4 = inlined_call_operand.hbm [shape: f32[2,24,256], index: 4, kind: output, shape index: {}]  }
   0x1   :  { %1500 = sst [smem:[#allocation17_spill]] %s1486_s2 }
   0x2   :  { %1501 = sst [smem:[#allocation18_spill]] %s1487_s3 }
   0x3   :  { %1502 = sst [smem:[#allocation19_spill]] %s1488_s4 }
   0x4   :  { %9 = vsyncpa [#allocation3], 0 }
   0x5   :  { %11 = vsyncpa [#allocation3 + $0x1], 0 }
   0x6   :  { %12 = vsyncpa [#allocation6], 0 }
   0x7   :  { %14 = vsyncpa [#allocation6 + $0x1], 0 }
   0x8   :  { %15 = vsyncpa [#allocation4], 0 }
   0x9   :  { %17 = vsyncpa [#allocation4 + $0x1], 0  ;;  %s1135_s15 = smov 0   ;;  %s1137_s16 = smov 0  }
   0xa   :  { %s1139_s17 = smov 0   ;;  %s1141_s18 = smov 0  }
   0xb   :  { %s1143_s19 = smov 0   ;;  %s1145_s20 = smov 0  }
   0xc   :  { %s1147_s21 = smov 0   ;;  %s1149_s22 = smov 0  }
   0xd   :  { %s1151_s23 = smov 0   ;;  %s1153_s24 = smov 0  }
   0xe   :  { %s1155_s25 = smov 0  }
   0xf LB: > { %1503 = sst [smem:[#allocation13_spill]] %s1085_s21  ;;  %s1191_s26 = sadd.s32 4294967295, %s1101_s25   ;;  %s1101_s25 = sphi %s1155_s25, %s23_s25   ;;  %s1097_s24 = sphi %s1153_s24, %s1545_s24   ;;  %s1093_s23 = sphi %s1151_s23, %s1544_s23   ;;  %s1089_s22 = sphi %s1149_s22, %s1543_s22   ;;  %s1085_s21 = sphi %s1147_s21, %s1542_s21   ;;  %s1081_s20 = sphi %s1145_s20, %s1541_s20   ;;  %s1077_s19 = sphi %s1143_s19, %s1540_s19   ;;  %s1073_s18 = sphi %s1141_s18, %s1539_s18   ;;  %s1069_s17 = sphi %s1139_s17, %s1538_s17   ;;  %s1065_s16 = sphi %s1137_s16, %s1537_s16   ;;  %s1061_s15 = sphi %s1135_s15, %s1536_s15  }
  0x10   : > { %1504 = sst [smem:[#allocation14_spill]] %s1089_s22  ;;  %p675_p0 = scmp.ge.s32.totalorder %s1101_s25, 1 }
  0x11   : > { %p1489_p1 = scmp.eq.s32.totalorder %s1191_s26, 0  ;;  %p170_p3 = scmp.lt.s32.totalorder %s1101_s25, 7 }
  0x12   : > { %s1103_s28 = smov [#allocation7]   ;;  %s1507_s2 = sld [smem:[#allocation17_spill]] }
  0x13   : > { %p1197_p4 = pnand %p675_p0, %p170_p3  ;;  %s182_s29 = sshll.u32 %s1103_s28, 4  ;;  %s183_s29 = int_to_ptr.vmem [resolvable:$true] %s182_s29 }
  0x15   : > { %s1505_s27 = scalar_select %p1197_p4, 1, 0 }
  0x16   : > { %p772_p5 = pneg %p1197_p4 }
  0x18   : > { %p1205_p6 = pnand %p772_p5, %p1489_p1  ;;  %s883_s7 = scalar_lea.hbm %s1507_s2, 3072 }
  0x19   : > { %p884_p7 = scmp.ne.s32.totalorder %s1507_s2, %s883_s7  ;;  %p890_p11 = scmp.lt.u32.totalorder %s883_s7, %s1507_s2 }
  0x1a   : > { %p885_p8 = pneg %p1205_p6 }
  0x1c   : > { %p886_p9 = pnand %p885_p8, %p884_p7 }
  0x1e   : > { %p887_p10 = pneg %p886_p9 }
  0x20   : > { %p892_p12 = pnand %p890_p11, %p887_p10 }
  0x22   : > { %895 = shalt.err (!%p892_p12)
}
  0x23   : > { %s896_s12 = scalar_lea.vmem %s183_s29, 3072  ;;  %p904_p5 = scmp.lt.s32.totalorder %s183_s29, %s183_s29 }
  0x24   : > { %p897_p13 = scmp.ne.s32.totalorder %s183_s29, %s896_s12  ;;  %p905_p2 = scmp.lt.s32.totalorder %s896_s12, %s896_s12 }
  0x26   : > { %p899_p0 = pnand %p897_p13, %p885_p8  ;;  %p906_p1 = por %p905_p2, %p904_p5 }
  0x28   : > { %p900_p3 = pneg %p899_p0 }
  0x2a   : > { %p907_p4 = pnand %p906_p1, %p900_p3 }
  0x2c   : > { %910 = shalt.err (!%p907_p4)
}
  0x2d   : > { %s1104_s13 = smov 384   ;;  %s1105_s14 = smov 24  }
  0x2e   : > { %775 = dma.hbm_to_vmem [thread:$0]  (!%p1205_p6), %s1507_s2, 3072, %s183_s29, [#allocation6], %s1104_s13, %s1104_s13, %s1105_s14  }
  0x2f   : > { %s32_s6 = sadd.s32 1, %s1093_s23  ;;  %s35_s7 = sadd.s32 1, %s1097_s24 }
  0x30   : > { %p33_p1 = scmp.ge.s32.totalorder %s32_s6, 3  ;;  %p39_p2 = scmp.lt.s32.totalorder %s1093_s23, 1 }
  0x31   : > { %s48_s8 = sadd.s32 1, %s1081_s20  ;;  %p55_p4 = scmp.ne.s32.totalorder %s1081_s20, %s1077_s19 }
  0x32   : > { %s1547_s6 = smov (%p33_p1, %s32_s6), 0  ;;  %s1549_s7 = smov (!%p33_p1, %s35_s7), %s1097_s24 }
  0x33   : > { %s40_s30 = scalar_select %p39_p2, %s1093_s23, 1 }
  0x34   : > { %p37_p7 = scmp.ge.s32.totalorder %s1549_s7, 2  ;;  %p41_p6 = scmp.lt.s32.totalorder %s1547_s6, 1 }
  0x35   : > { %p1497_p8 = scmp.eq.s32.totalorder %s1101_s25, 0  ;;  %p61_p9 = scmp.ne.s32.totalorder %s1077_s19, %s1073_s18 }
  0x36   : > { %s1551_s7 = smov (%p37_p7, %s1549_s7), 0  ;;  %p1510_p11 = scmp.eq.s32.totalorder %s1191_s26, 0 }
  0x37   : > { %1508 = sst [smem:[#allocation15_spill]] %s1551_s7  ;;  %s43_s9 = ssub.s32 %s1097_s24, %s1551_s7 }
  0x38   : > { %s42_s29 = scalar_select %p41_p6, %s1547_s6, 1 }
  0x39   : > { %p1246_p10 = por %p1497_p8, %p55_p4  ;;  %p1252_p12 = por %p1510_p11, %p61_p9 }
  0x3a   : > { %s44_s11 = ssub.s32 %s40_s30, %s42_s29  ;;  %s72_s18 = ssub.s32 %s1093_s23, %s1547_s6 }
  0x3b   : > { %s1511_s12 = scalar_select %p1252_p12, 1, 0 }
  0x3c   : > { %s45_s13 = sor.u32 %s44_s11, %s43_s9  ;;  %s1258_s14 = sor.u32 %s72_s18, %s43_s9 }
  0x3d   : > { %1512 = sst [smem:[#allocation16_spill]] %s1511_s12  ;;  %p46_p13 = scmp.eq.s32.totalorder %s45_s13, 0 }
  0x3e   : > { %p1496_p3 = scmp.lt.s32.totalorder %s1101_s25, 6  ;;  %s199_s5 = sand.u32 1, %s1081_s20  }
  0x3f   : > { %s1263_s28 = scalar_select %p46_p13, %s1081_s20, %s48_s8  }
  0x40   : > { %s679_s2 = sshll.u32 %s1097_s24, 1  ;;  %s678_s29 = sshll.u32 %s199_s5, 3 }
  0x41   : > { %s210_s7 = sadd.s32 %s679_s2, %s40_s30  ;;  %s203_s3 = scalar_lea.vmem [#allocation2], %s678_s29 }
  0x42   : > { %s680_s4 = sshll.u32 %s210_s7, 7  ;;  %s214_s22 = sshll.u32 %s203_s3, 4  ;;  %s1272_s22 = int_to_ptr.vmem [resolvable:$true] %s214_s22 }
  0x43   : > { %s1270_s12 = scalar_lea.hbm %s1484_s0, %s680_s4  ;;  %p1278_p5 = pnand %p1496_p3, %p1246_p10 }
  0x44   : > { %s200_s2 = scalar_lea.sflag [#allocation3], %s199_s5  ;;  %s911_s3 = scalar_lea.hbm %s1270_s12, 128 }
  0x45   : > { %p912_p1 = scmp.ne.s32.totalorder %s1270_s12, %s911_s3  ;;  %p913_p2 = pneg %p1278_p5 }
  0x46   : > { %s916_s7 = scalar_lea.hbm %s1484_s0, 512  ;;  %p917_p6 = scmp.lt.u32.totalorder %s1270_s12, %s1484_s0 }
  0x47   : > { %p914_p4 = pnand %p913_p2, %p912_p1  ;;  %p918_p9 = scmp.lt.u32.totalorder %s916_s7, %s911_s3 }
  0x48   : > { %p920_p11 = scmp.lt.u32.totalorder %s911_s3, %s1270_s12 }
  0x49   : > { %p915_p7 = pneg %p914_p4  ;;  %p919_p10 = por %p918_p9, %p917_p6 }
  0x4b   : > { %p921_p13 = por %p920_p11, %p919_p10 }
  0x4d   : > { %p922_p3 = pnand %p921_p13, %p915_p7 }
  0x4f   : > { %925 = shalt.err (!%p922_p3)
}
  0x50   : > { %s926_s10 = scalar_lea.vmem %s1272_s22, 128  ;;  %s1106_s13 = smov [#allocation2]  }
  0x51   : > { %p927_p1 = scmp.ne.s32.totalorder %s1272_s22, %s926_s10  ;;  %s931_s18 = sshll.u32 %s1106_s13, 4  ;;  %s932_s18 = int_to_ptr.vmem [resolvable:$false] %s931_s18 }
  0x52   : > { %s933_s5 = scalar_lea.vmem %s932_s18, 256  ;;  %p934_p0 = scmp.lt.s32.totalorder %s1272_s22, %s932_s18 }
  0x53   : > { %p929_p4 = pnand %p927_p1, %p913_p2  ;;  %p935_p6 = scmp.lt.s32.totalorder %s933_s5, %s926_s10 }
  0x55   : > { %p930_p8 = pneg %p929_p4  ;;  %p936_p9 = por %p935_p6, %p934_p0 }
  0x57   : > { %p937_p10 = pnand %p936_p9, %p930_p8 }
  0x59   : > { %940 = shalt.err (!%p937_p10)
}
  0x5a   : > { %779 = dma.hbm_to_vmem [thread:$0]  (!%p1278_p5), %s1270_s12, 128, %s1272_s22, %s200_s2  }
  0x5b   : > { %s674_s29 = sadd.s32 4294967294, %s1101_s25   ;;  %s76_s11 = sadd.s32 1, %s1069_s17 }
  0x5c   : > { %p1514_p8 = scmp.eq.s32.totalorder %s1258_s14, 0  ;;  %p83_p0 = scmp.ne.s32.totalorder %s1069_s17, %s1065_s16 }
  0x5d   : > { %p89_p3 = scmp.ne.s32.totalorder %s1065_s16, %s1061_s15  ;;  %p163_p2 = scmp.eq.s32.totalorder %s674_s29, 5 }
  0x5e   : > { %s1312_s8 = scalar_select %p1514_p8, %s1069_s17, %s76_s11  }
  0x5f   : > { %s221_s3 = sand.u32 1, %s1101_s25   ;;  %p1515_p7 = scmp.eq.s32.totalorder %s1101_s25, 0 }
  0x60   : > { %p1516_p13 = scmp.eq.s32.totalorder %s1191_s26, 0  ;;  %p1518_p4 = scmp.eq.s32.totalorder %s1191_s26, 5 }
  0x61   : > { %p85_p11 = por %p83_p0, %p1515_p7  ;;  %p1333_p5 = por %p163_p2, %p89_p3 }
  0x62   : > { %p1323_p1 = por %p89_p3, %p1516_p13  ;;  %p1329_p6 = por %p1518_p4, %p83_p0 }
  0x63   : > { %s1520_s12 = scalar_select %p1333_p5, 1, 0 }
  0x64   : > { %s1517_s4 = scalar_select %p1323_p1, 1, 0 }
  0x65   : > { %s1519_s22 = scalar_select %p1329_p6, 1, 0 }
  0x66   : > { %s223_s14 = sand.u32 1, %s1069_s17   ;;  %s760_s21 = smul.u32 3, %s1097_s24 }
  0x67   : > { %s681_s2 = sshll.u32 %s223_s14, 1  ;;  %p1521_p9 = scmp.lt.s32.totalorder %s1101_s25, 6 }
  0x68   : > { %s230_s30 = sadd.s32 %s1093_s23, %s760_s21  ;;  %s225_s9 = scalar_lea.vmem [#allocation5], %s681_s2 }
  0x69   : > { %p1341_p10 = pnand %p1521_p9, %p85_p11  ;;  %s234_s10 = sshll.u32 %s225_s9, 4  ;;  %s1346_s10 = int_to_ptr.vmem [resolvable:$true] %s234_s10 }
  0x6a   : > { %s682_s13 = sshll.u32 %s230_s30, 5  ;;  %s222_s11 = scalar_lea.sflag [#allocation6], %s221_s3 }
  0x6b   : > { %s1351_s29 = scalar_lea.hbm %s1485_s1, %s682_s13  ;;  %p943_p0 = pneg %p1341_p10 }
  0x6c   : > { %s941_s14 = scalar_lea.hbm %s1351_s29, 32  ;;  %s946_s30 = scalar_lea.hbm %s1485_s1, 192 }
  0x6d   : > { %p942_p8 = scmp.ne.s32.totalorder %s1351_s29, %s941_s14  ;;  %p947_p7 = scmp.lt.u32.totalorder %s1351_s29, %s1485_s1 }
  0x6e   : > { %p948_p11 = scmp.lt.u32.totalorder %s946_s30, %s941_s14  ;;  %p950_p4 = scmp.lt.u32.totalorder %s941_s14, %s1351_s29 }
  0x6f   : > { %p944_p3 = pnand %p943_p0, %p942_p8 }
  0x70   : > { %p949_p13 = por %p948_p11, %p947_p7 }
  0x71   : > { %p945_p2 = pneg %p944_p3 }
  0x72   : > { %p951_p9 = por %p950_p4, %p949_p13 }
  0x74   : > { %p952_p5 = pnand %p951_p9, %p945_p2 }
  0x76   : > { %955 = shalt.err (!%p952_p5)
}
  0x77   : > { %s956_s3 = scalar_lea.vmem %s1346_s10, 32  ;;  %s1107_s18 = smov [#allocation5]  }
  0x78   : > { %p957_p8 = scmp.ne.s32.totalorder %s1346_s10, %s956_s3  ;;  %s961_s5 = sshll.u32 %s1107_s18, 4  ;;  %s962_s5 = int_to_ptr.vmem [resolvable:$false] %s961_s5 }
  0x79   : > { %s963_s2 = scalar_lea.vmem %s962_s5, 64  ;;  %p964_p1 = scmp.lt.s32.totalorder %s1346_s10, %s962_s5 }
  0x7a   : > { %p959_p3 = pnand %p957_p8, %p943_p0  ;;  %p965_p7 = scmp.lt.s32.totalorder %s963_s2, %s956_s3 }
  0x7c   : > { %p960_p6 = pneg %p959_p3  ;;  %p966_p11 = por %p965_p7, %p964_p1 }
  0x7e   : > { %p967_p13 = pnand %p966_p11, %p960_p6 }
  0x80   : > { %970 = shalt.err (!%p967_p13)
}
  0x81   : > { %782 = dma.hbm_to_vmem [thread:$0]  (!%p1341_p10), %s1351_s29, 32, %s1346_s10, %s222_s11  }
  0x82   : > { %p1523_p5 = scmp.ne.s32.totalorder %s1505_s27, 0 }
  0x83   : > { %s245_s21 = sand.u32 (!%p1523_p5), 1, %s1077_s19  }
  0x84   : > { %243 = sbr.rel (%p1523_p5) target bundleno = 405 (0x195), region = 36  ;;  %s1381_s30 = sshll.u32 (!%p1523_p5), %s245_s21, 3 }
  0x85   : > { %s246_s9 = scalar_lea.sflag (!%p1523_p5), [#allocation3], %s245_s21  ;;  %s249_s13 = scalar_lea.vmem (!%p1523_p5), [#allocation2], %s1381_s30 }
  0x8b   : > { %1044 = dma.done.wait (%p1252_p12), %s246_s9, 128  }
  0x8c   : > { %1046 = vsyncadd (%p1252_p12), %s246_s9, 4294967168  ;;  %s254_s7 = sand.u32 1, %s1191_s26   ;;  %s1390_s10 = sand.u32 1, %s1065_s16  }
  0x8d   : > { %s685_s27 = sshll.u32 %s1390_s10, 1  ;;  %s255_s29 = scalar_lea.sflag [#allocation6], %s254_s7 }
  0x8e   : > { %s1393_s11 = scalar_lea.vmem [#allocation5], %s685_s27  ;;  %p1525_p1 = scmp.ne.s32.totalorder %s1517_s4, 0 }
  0x90   : > { %1048 = dma.done.wait (%p1525_p1), %s255_s29, 32  }
  0x91   : > { %1050 = vsyncadd (%p1525_p1), %s255_s29, 4294967264  ;;  %p1526_p6 = scmp.eq.s32.totalorder %s1191_s26, 0 }
  0x93   : > { %1052 = dma.done.wait (%p1526_p6), [#allocation6], 3072   ;;  %p1527_p12 = pmov %p1526_p6 }
  0x94   : > { %s1528_s3 = sld [smem:[#allocation13_spill]]  ;;  %v1108_v0 = vmov 0.0   ;;  %v328_v1 = vlaneseq  ;;  %v295_v2 = vld [vmem:[#allocation7 + $0x8] sm:$0xff]  ;;  %v298_v3 = vld [vmem:[#allocation7 + $0x20] sm:$0xff]  ;;  %v296_v4 = vld [vmem:[#allocation7 + $0x10] sm:$0xff]  ;;  %vm324_vm0 = vcmask 1041408  }
  0x95   : > { %1054 = vsyncadd (%p1527_p12), [#allocation6], 4294964224  ;;  %413 = vmatprep.mubr.f32.mxu0 %v1108_v0  ;;  %v728_v5 = vpack.c.bf16 %v298_v3, %v295_v2  ;;  %v299_v6 = vld [vmem:[#allocation7 + $0x28] sm:$0xff]  ;;  %v294_v7 = vld [vmem:[#allocation7] sm:$0xff]  ;;  %vm342_vm2 = vcmask 523264   ;;  %s1529_s26 = sld [smem:[#allocation14_spill]] }
  0x96   : > { %v297_v8 = vld [vmem:[#allocation7 + $0x18] sm:$0xff]  ;;  %v329_v9 = vshrl.u32 %v328_v1, 7  ;;  %v744_v10 = vpack.c.bf16 %v299_v6, %v296_v4  ;;  %v304_v13 = vld [vmem:[#allocation7 + $0x50] sm:$0xff]  ;;  %v302_v14 = vld [vmem:[#allocation7 + $0x40] sm:$0xff]  ;;  %s1530_s14 = sld [smem:[#allocation18_spill]]  ;;  %s687_s30 = sshll.u32 %s1390_s10, 4 }
  0x97   : > { %v730_v11 = vpack.c.bf16 %v297_v8, %v294_v7  ;;  %v301_v12 = vld [vmem:[#allocation7 + $0x38] sm:$0xff]  ;;  %729 = vmatprep.subr.bf16.mxu0 %v728_v5  ;;  %v300_v18 = vld [vmem:[#allocation7 + $0x30] sm:$0xff]  ;;  %v303_v19 = vld [vmem:[#allocation7 + $0x48] sm:$0xff]  ;;  %vm511_vm4 = vcmask 1040384   ;;  %vm521_vm5 = vcmask 1045504   ;;  %s291_s27 = scalar_lea.vmem [#allocation8], %s687_s30 }
  0x98   : > { %v732_v16 = vpack.c.bf16 %v304_v13, %v301_v12  ;;  %v305_v17 = vld [vmem:[#allocation7 + $0x58] sm:$0xff]  ;;  %745 = vmatprep.subr.bf16.mxu1 %v744_v10  ;;  %v734_v21 = vpack.c.bf16 %v303_v19, %v300_v18  ;;  %v307_v22 = vld [vmem:[#allocation7 + $0x68] sm:$0xff]  ;;  %v310_v23 = vld [vmem:[#allocation7 + $0x80] sm:$0xff]  ;;  %v330_v33 = vadd.s32 8, %v329_v9  ;;  %s553_s29 = sshll.u32 %s291_s27, 4  ;;  %s537_s4 = scalar_lea.sflag [#allocation4], %s1390_s10  ;;  %s1423_s29 = int_to_ptr.vmem [resolvable:$true] %s553_s29 }
  0x99   : > { %731 = vmatpush1.bf16.msra.mxu0 %v730_v11  ;;  %v748_v20 = vpack.c.bf16 %v305_v17, %v302_v14  ;;  %v308_v24 = vld [vmem:[#allocation7 + $0x70] sm:$0xff]  ;;  %747 = vmatpush3.bf16.msra.mxu1 %v744_v10  ;;  %v736_v25 = vpack.c.bf16 %v310_v23, %v307_v22  ;;  %v311_v26 = vld [vmem:[#allocation7 + $0x88] sm:$0xff]  ;;  %v306_v27 = vld [vmem:[#allocation7 + $0x60] sm:$0xff]  ;;  %s971_s2 = scalar_lea.vmem %s1423_s29, 256  ;;  %p1533_p0 = scmp.ne.s32.totalorder %s1519_s22, 0 }
  0x9a   : > { %s688_s18 = sshll.u32 %s1528_s3, 3  ;;  %733 = vmatprep.subr.bf16.mxu0 %v732_v16  ;;  %v309_v28 = vld [vmem:[#allocation7 + $0x78] sm:$0xff]  ;;  %v752_v30 = vpack.c.bf16 %v311_v26, %v308_v24  ;;  %v316_v32 = vld [vmem:[#allocation7 + $0xb0] sm:$0xff]  ;;  %v314_v34 = vld [vmem:[#allocation7 + $0xa0] sm:$0xff]  ;;  %s695_s9 = sshll.u32 %s1528_s3, 1 }
  0x9b   : > { %s1405_s5 = sadd.s32 4294967294, %s688_s18  ;;  %749 = vmatprep.subr.bf16.mxu1 %v748_v20  ;;  %v313_v31 = vld [vmem:[#allocation7 + $0x98] sm:$0xff]  ;;  %v738_v36 = vpack.c.bf16 %v309_v28, %v306_v27  ;;  %v312_v40 = vld [vmem:[#allocation7 + $0x90] sm:$0xff]  ;;  %v315_v41 = vld [vmem:[#allocation7 + $0xa8] sm:$0xff]  ;;  %s761_s21 = smul.u32 6, %s1529_s26 }
  0x9c   : > { %v331_v15 = vstv %s1405_s5  ;;  %v317_v35 = vld [vmem:[#allocation7 + $0xb8] sm:$0xff]  ;;  %v740_v39 = vpack.c.bf16 %v316_v32, %v313_v31  ;;  %v742_v46 = vpack.c.bf16 %v315_v41, %v312_v40  ;;  %v693_v49 = vld [vmem:[%s1530_s14] ss:$0 sm:$0xff]  ;;  %s1531_s18 = sld [smem:[#allocation19_spill]]  ;;  %p972_p10 = scmp.ne.s32.totalorder %s1423_s29, %s971_s2 }
  0x9d   : > { %v332_v29 = vadd.s32 %v331_v15, %v329_v9  ;;  %735 = vmatpush1.bf16.msra.mxu0 %v734_v21  ;;  %v319_v37 = vld [vmem:[%s1393_s11] sm:$0x3]  ;;  %v320_v38 = vld [vmem:[%s249_s13] sm:$0xff]  ;;  %751 = vmatpush3.bf16.msra.mxu1 %v748_v20  ;;  %v756_v43 = vpack.c.bf16 %v317_v35, %v314_v34  ;;  %v333_v44 = vadd.s32 %v331_v15, %v330_v33  ;;  %s549_s13 = sadd.s32 %s761_s21, %s695_s9  ;;  %s1109_s14 = smov [#allocation8]  }
  0x9e   : > { %737 = vmatprep.subr.bf16.mxu0 %v736_v25  ;;  %v322_v42 = vrot.slane %v320_v38, 6  ;;  %753 = vmatprep.subr.bf16.mxu1 %v752_v30  ;;  %s696_s7 = sshll.u32 %s549_s13, 7  ;;  %p973_p2 = pnand %p972_p10, %p1533_p0 }
  0x9f   : > { %vm334_vm1 = vcmp.lt.s32.totalorder %v332_v29, 16  ;;  %vm335_vm3 = vcmp.lt.s32.totalorder %v333_v44, 16  ;;  %s975_s21 = sshll.u32 %s1109_s14, 4  ;;  %s976_s21 = int_to_ptr.vmem [resolvable:$false] %s975_s21 }
  0xa0   : > { %v325_v45 = vsel %vm324_vm0, %v319_v37, %v322_v42  ;;  %v341_v48 = vsel %vm335_vm3, %v322_v42, 0.0  ;;  %p974_p4 = pneg %p973_p2  ;;  %s977_s30 = scalar_lea.vmem %s976_s21, 512 }
  0xa1   : > { %739 = vmatpush1.bf16.msra.mxu0 %v738_v36  ;;  %v340_v47 = vsel %vm334_vm1, %v325_v45, 0.0  ;;  %755 = vmatpush3.bf16.msra.mxu1 %v752_v30  ;;  %p978_p9 = scmp.lt.s32.totalorder %s1423_s29, %s976_s21  ;;  %p979_p8 = scmp.lt.s32.totalorder %s977_s30, %s971_s2 }
  0xa2   : > { %741 = vmatprep.subr.bf16.mxu0 %v740_v39  ;;  %757 = vmatprep.subr.bf16.mxu1 %v756_v43  ;;  %s1532_s5 = smov %s1531_s18  ;;  %s1421_s26 = scalar_lea.hbm %s1531_s18, %s696_s7 }
  0xa3   : > { %725 = vmatprep.mubr.msk.f32.mxu1 %vm342_vm2, %v340_v47  ;;  %p980_p3 = por %p979_p8, %p978_p9 }
  0xa5   : > { %743 = vmatpush1.bf16.msra.mxu0 %v742_v46  ;;  %759 = vmatpush3.bf16.msra.mxu1 %v756_v43  ;;  %p981_p7 = pnand %p980_p3, %p974_p4 }
  0xa8   : > { %689 = vmatmul.mubr.msk.f32.vlgmr.msra.gmra.mrb[0].mxu0 %vm342_vm2, %v340_v47  ;;  %726 = vmatmul.mubr.msk.f32.vlgmr.msra.gmra.mrb[0].mxu1 %vm342_vm2, %v341_v48 }
  0xa9   : > { %419 = vmatprep.mubr.f32.mxu0 %v1108_v0 }
  0xac   : > { %690 = vmatmul.mubr.msk.f32.gmra.mrb[2].mxu0 %vm342_vm2, %v341_v48 }
 0x17b   : > { %v415_v50 = vpop.f32.mrb[0].mxu0  ;;  %v727_v52 = vpop.f32.mrb[0].mxu1 }
 0x17c   : > { %v507_v51 = vadd.f32 %v693_v49, %v415_v50  ;;  %v417_v53 = vpop.f32.mrb[1].mxu0  ;;  %v513_v54 = vrot.slane %v727_v52, 7  ;;  %v492_v55 = vpop.f32.mrb[1].mxu1 }
 0x17d   : > { %v512_v56 = vrot.slane %v492_v55, 7  ;;  %v527_v57 = vadd.f32 %v693_v49, %v417_v53 }
 0x17f   : > { %v421_v58 = vpop.f32.mrb[2].mxu0  ;;  %v517_v59 = vadd.f32 %v512_v56, %v507_v51  ;;  %v514_v61 = vsel %vm511_vm4, %v512_v56, %v513_v54  ;;  %v531_v1 = vrot.slane %v527_v57, 2 }
 0x180   : > { %v508_v60 = vadd.f32 %v693_v49, %v421_v58  ;;  %v423_v62 = vpop.f32.mrb[3].mxu0 }
 0x181   : > { %v528_v63 = vadd.f32 %v693_v49, %v423_v62  ;;  %v522_v3 = vrot.slane %v517_v59, 2 }
 0x182   : > { %v518_v0 = vadd.f32 %v514_v61, %v508_v60 }
 0x183   : > { %v532_v2 = vrot.slane %v528_v63, 2 }
 0x184   : > { %v523_v4 = vrot.slane %v518_v0, 2 }
 0x185   : > { %v533_v5 = vsel %vm521_vm5, %v531_v1, %v532_v2 }
 0x186   : > { %v524_v6 = vsel %vm521_vm5, %v522_v3, %v523_v4  ;;  %535 = vst [vmem:[%s291_s27 + $0x8] sm:$0xff] %v533_v5 }
 0x187   : > { %526 = vst [vmem:[%s291_s27] sm:$0xff] %v524_v6 }
 0x188   : > { %984 = shalt.err (!%p981_p7)
}
 0x189   : > { %s985_s10 = scalar_lea.hbm %s1421_s26, 256  ;;  %s989_s7 = scalar_lea.hbm %s1532_s5, 1536 }
 0x18a   : > { %p986_p11 = scmp.ne.s32.totalorder %s1421_s26, %s985_s10  ;;  %p990_p1 = scmp.lt.u32.totalorder %s1421_s26, %s1532_s5 }
 0x18b   : > { %p991_p6 = scmp.lt.u32.totalorder %s989_s7, %s985_s10  ;;  %p993_p10 = scmp.lt.u32.totalorder %s985_s10, %s1421_s26 }
 0x18c   : > { %p987_p13 = pnand %p986_p11, %p1533_p0 }
 0x18d   : > { %p992_p12 = por %p991_p6, %p990_p1 }
 0x18e   : > { %p988_p5 = pneg %p987_p13 }
 0x18f   : > { %p994_p2 = por %p993_p10, %p992_p12 }
 0x191   : > { %p995_p4 = pnand %p994_p2, %p988_p5 }
 0x193   : > { %998 = shalt.err (!%p995_p4)
}
 0x194   : > { %770 = dma.vmem_to_hbm [thread:$0]  (%p1533_p0), %s1423_s29, 256, %s1421_s26, %s537_s4  }
 0x195 PF: > { %p790_p9 = scmp.ge.s32.totalorder %s1101_s25, 2  ;;  %s565_s3 = sand.u32 1, %s1061_s15  }
 0x196   : > { %p1534_p8 = scmp.ne.s32.totalorder %s1520_s12, 0  ;;  %s566_s18 = scalar_lea.sflag [#allocation4], %s565_s3 }
 0x198   : > { %p784_p3 = pnand %p790_p9, %p1534_p8 }
 0x19a   : > { %1056 = dma.done.wait (!%p784_p3), %s566_s18, 256  }
 0x19b   : > { %1058 = vsyncadd (!%p784_p3), %s566_s18, 4294967040  ;;  %s23_s25 = sadd.s32 1, %s1101_s25   ;;  %s1535_s29 = sld [smem:[#allocation15_spill]] }
 0x19c   : > { %p20_p7 = scmp.ge.s32.totalorder %s23_s25, 8   ;;  %s1536_s15 = smov %s1065_s16 }
 0x19d   : > { %s1537_s16 = smov %s1069_s17  ;;  %s1538_s17 = smov %s1312_s8 }
 0x19e   : > { %s1539_s18 = smov %s1077_s19  ;;  %s1540_s19 = smov %s1081_s20 }
 0x19f   : > { %s1541_s20 = smov %s1263_s28  ;;  %s1542_s21 = smov %s1093_s23 }
 0x1a0   : > { %s1543_s22 = smov %s1097_s24  ;;  %s1544_s23 = smov %s1547_s6 }
 0x1a1   : > { %s1545_s24 = smov %s1535_s29  ;;  %22 = sbr.rel (!%p20_p7) target bundleno = 15 (0xf), region = 98 }
 0x1a8   :  { %571 = vsyncpa [#allocation3], 1 }
 0x1a9   :  { %573 = vsyncpa [#allocation3 + $0x1], 1 }
 0x1aa   :  { %574 = vsyncpa [#allocation6], 1 }
 0x1ab   :  { %576 = vsyncpa [#allocation6 + $0x1], 1 }
 0x1ac   :  { %577 = vsyncpa [#allocation4], 1 }
 0x1ad   :  { %579 = vsyncpa [#allocation4 + $0x1], 1 }

</bundles_post_ra>
